<compile_context>
chip_gen: v5e
topology: v5e:2x2
jax: 0.10.0
libtpu: 0.0.40
codegen_flags: <defaults>
</compile_context>

<pallas_src>
import functools

import jax
import jax.numpy as jnp
from jax import lax
from jax.experimental import pallas as pl
from jax.experimental.pallas import tpu as pltpu


_LANE = 128
_SUBLANE = 8
_ONEHOT_MAX_VOCAB = 1024      # above this the (T, V) onehot / extra FLOPs stop paying off
_HBM_ROWS_IN_FLIGHT = 16      # outstanding row DMAs per block in the HBM path (power of 2)


def _round_up(x: int, m: int) -> int:
    return (x + m - 1) // m * m


def _vmem_budget_bytes() -> int:
    """Usable per-TensorCore VMEM budget (capacity minus headroom)."""
    try:
        cap = int(pltpu.get_tpu_info().vmem_capacity_bytes)
    except Exception:
        cap = 64 << 20                      # v7x per-TC VMEM (smallest target)
    # Per-core VMEM is <= 128 MiB on v5e/v6e/v7x; clamp in case the query
    # reports a chip-level total.
    cap = min(cap, 128 << 20)
    try:
        kind = jax.devices()[0].device_kind.lower()
    except Exception:
        kind = ""
    if "v7" in kind or "7x" in kind:
        # v7x has 64 MiB per TensorCore; be conservative in case the capacity
        # query is chip-level on the dual-TC part.
        cap = min(cap, 64 << 20)
    return cap - (8 << 20)                  # headroom for Mosaic internals


# ---------------------------------------------------------------------------
# Kernel bodies
# ---------------------------------------------------------------------------


def _onehot_block_kernel(ids_ref, table_ref, out_ref):
    """out = onehot(ids) @ table for one (block_tokens, Dp) output tile.

    ids_ref:   (block_tokens, 1) int32, VMEM column
    table_ref: (V, Dp) VMEM-resident table (single-buffered, fetched once)
    out_ref:   (block_tokens, Dp) VMEM output tile
    """
    n_vocab = table_ref.shape[0]
    n_tok = out_ref.shape[0]
    vocab_iota = lax.broadcasted_iota(jnp.int32, (n_tok, n_vocab), 1)
    onehot = (ids_ref[...] == vocab_iota).astype(table_ref.dtype)
    out_ref[...] = jnp.dot(
        onehot, table_ref[...], preferred_element_type=jnp.float32
    ).astype(out_ref.dtype)


def _gather_vmem_kernel(ids_ref, table_ref, out_ref, *, block_tokens, unroll):
    """Row gather from a VMEM-resident table: one direct row copy per token.

    ids_ref:   (1, block_tokens) int32, SMEM window (per-block)
    table_ref: (V, Dp) VMEM-resident table (single-buffered)
    out_ref:   (block_tokens, Dp) VMEM output tile
    """
    def body(t, carry):
        out_ref[pl.ds(t, 1), :] = table_ref[pl.ds(ids_ref[0, t], 1), :]
        return carry

    # Unroll gives the LLO scheduler visibility to overlap the scalar id read
    # + address math + row load of iteration t+1 under the store of t; the
    # unroll factor is capped in the wrapper so live vregs stay bounded.
    lax.fori_loop(0, block_tokens, body, 0, unroll=unroll)


def _gather_hbm_kernel(ids_ref, table_ref, out_ref, copy_sems, *,
                       block_tokens, window):
    """Row gather with the table resident in HBM (large-vocab path).

    A sliding window of `window` single-row DMAs (HBM table row -> output
    tile row) is kept in flight; the output tile is filled entirely by the
    DMA engines while descriptors for later rows are issued.

    ids_ref:    (1, block_tokens) int32, SMEM window (per-block)
    table_ref:  (V, D) table in HBM (memory_space=pl.ANY)
    out_ref:    (block_tokens, D) VMEM output tile
    copy_sems:  (window,) DMA semaphores
    """
    def row_copy(t, slot):
        return pltpu.make_async_copy(
            table_ref.at[pl.ds(ids_ref[0, t], 1), :],
            out_ref.at[pl.ds(t, 1), :],
            copy_sems.at[slot])

    # Prime the window (window <= block_tokens is guaranteed by the wrapper).
    for w in range(window):
        row_copy(w, w).start()

    def body(t, carry):
        slot = t % window                       # window is a power of two
        row_copy(t, slot).wait()
        nxt = t + window

        @pl.when(nxt < block_tokens)
        def _():
            row_copy(nxt, slot).start()

        return carry

    lax.fori_loop(0, block_tokens, body, 0)


# ---------------------------------------------------------------------------
# Wrapper
# ---------------------------------------------------------------------------


def _choose_block_tokens(n_tok: int, bytes_per_token: int, slack_bytes: int) -> int:
    """Largest token block that fits the VMEM slack; keep >= 2 grid blocks."""
    bt = _SUBLANE
    for cand in (1024, 512, 256, 128, 64, 32, 16, 8):
        if cand * bytes_per_token <= slack_bytes:
            bt = cand
            break
    # Cheap way to keep at least 2 grid blocks so both v7x TensorCores get work.
    bt = min(bt, max(_SUBLANE, _round_up(pl.cdiv(n_tok, 2), _SUBLANE)))
    return bt


def embedding_lookup(table: jax.Array, ids: jax.Array,
                     *, force_path: str | None = None) -> jax.Array:
    """Pallas embedding gather: table (V, D), ids (B, S) int -> (B, S, D)."""
    B, S = ids.shape
    V, D = table.shape
    n_tok = B * S
    itemsize = jnp.dtype(table.dtype).itemsize

    # Clamp out-of-range ids (PyTorch nn.Embedding raises; on TPU an OOB row
    # index would read undefined memory).
    # TODO(synk): surface an upstream assert instead of silently clamping.
    flat_ids = jnp.clip(ids.reshape(-1).astype(jnp.int32), 0, V - 1)

    budget = _vmem_budget_bytes()
    d_pad = _round_up(D, _LANE)
    table_bytes = V * d_pad * itemsize          # single-buffered resident copy

    if force_path is None:
        if table_bytes + (2 << 20) <= budget:
            path = "onehot" if V <= _ONEHOT_MAX_VOCAB else "gather_vmem"
        else:
            path = "gather_hbm"
    else:
        path = force_path

    # ---- per-path sizing ---------------------------------------------------
    if path == "gather_hbm":
        d_out = D                                # table stays in HBM unpadded
        per_tok = 2 * d_out * itemsize + 64      # double-buffered out tile + ids
        slack = budget - (2 << 20)
    elif path == "onehot":
        d_out = d_pad
        # out tile (x2) + ids column (x2) + onehot intermediate + f32 acc.
        per_tok = 2 * d_out * itemsize + 2 * 512 + V * itemsize + d_out * 4
        slack = budget - table_bytes - (2 << 20)
    else:  # "gather_vmem"
        d_out = d_pad
        per_tok = 2 * d_out * itemsize + 64
        slack = budget - table_bytes - (2 << 20)

    block_tokens = _choose_block_tokens(n_tok, per_tok, slack)

    n_blocks = pl.cdiv(n_tok, block_tokens)
    n_pad = n_blocks * block_tokens
    if n_pad != n_tok:
        flat_ids = jnp.pad(flat_ids, (0, n_pad - n_tok))

    # Lane-pad the embedding dim for the VMEM-resident paths so every row
    # load and the output writeback are unmasked.
    if d_out != D:
        table_k = jnp.pad(table, ((0, 0), (0, d_out - D)))
    else:
        table_k = table

    out_shape = jax.ShapeDtypeStruct((n_pad, d_out), table.dtype)
    out_spec = pl.BlockSpec((block_tokens, d_out), lambda i: (i, 0))

    if path == "onehot":
        ids_arg = flat_ids.reshape(n_pad, 1)
        ids_spec = pl.BlockSpec((block_tokens, 1), lambda i: (i, 0))
        table_spec = pl.BlockSpec((V, d_out), lambda i: (0, 0),
                                  pipeline_mode=pl.Buffered(1))
        kernel = _onehot_block_kernel
        scratch = ()
        vmem_need = (table_bytes + 2 * block_tokens * d_out * itemsize
                     + block_tokens * (V * itemsize + d_out * 4 + 1024)
                     + (2 << 20))
        flops = 2 * n_pad * V * d_out
    elif path == "gather_vmem":
        ids_arg = flat_ids.reshape(n_blocks, block_tokens)
        ids_spec = pl.BlockSpec((1, block_tokens), lambda i: (i, 0),
                                memory_space=pltpu.MemorySpace.SMEM)
        table_spec = pl.BlockSpec((V, d_out), lambda i: (0, 0),
                                  pipeline_mode=pl.Buffered(1))
        # Cap unrolled rows-in-flight so live vregs stay ~<= 32 for large D.
        unroll = max(1, min(8, 32 // max(1, d_out // _LANE)))
        kernel = functools.partial(_gather_vmem_kernel,
                                   block_tokens=block_tokens, unroll=unroll)
        scratch = ()
        vmem_need = (table_bytes + 2 * block_tokens * d_out * itemsize
                     + (2 << 20))
        flops = 0
        # TODO(synk): for bf16/int8 tables, bitcast rows to uint32 in the
        # wrapper so every row load/store stays full-width and unmasked.
    else:  # "gather_hbm"
        window = min(_HBM_ROWS_IN_FLIGHT, block_tokens)
        ids_arg = flat_ids.reshape(n_blocks, block_tokens)
        ids_spec = pl.BlockSpec((1, block_tokens), lambda i: (i, 0),
                                memory_space=pltpu.MemorySpace.SMEM)
        table_spec = pl.BlockSpec(memory_space=pl.ANY)
        kernel = functools.partial(_gather_hbm_kernel,
                                   block_tokens=block_tokens, window=window)
        scratch = (pltpu.SemaphoreType.DMA((window,)),)
        vmem_need = 2 * block_tokens * d_out * itemsize + (2 << 20)
        flops = 0

    if path == "gather_hbm":
        table_traffic = n_pad * d_out * itemsize    # one row DMA per token
    else:
        table_traffic = table_bytes                 # table DMA'd to VMEM once
    bytes_accessed = int(table_traffic + n_pad * 4 + n_pad * d_out * itemsize)

    vmem_limit = int(min(max(vmem_need + (4 << 20), 16 << 20), 128 << 20))

    out = pl.pallas_call(
        kernel,
        out_shape=out_shape,
        grid=(n_blocks,),
        in_specs=[ids_spec, table_spec],
        out_specs=out_spec,
        scratch_shapes=list(scratch),
        compiler_params=pltpu.CompilerParams(
            dimension_semantics=("parallel",),
            vmem_limit_bytes=vmem_limit,
        ),
        cost_estimate=pl.CostEstimate(
            flops=int(flops), transcendentals=0, bytes_accessed=bytes_accessed),
    )(ids_arg, table_k)

    out = out[:n_tok]
    if d_out != D:
        out = out[:, :D]
    return out.reshape(B, S, D)


# ---------------------------------------------------------------------------
# Module port
# ---------------------------------------------------------------------------


class XlingEmbeddingLayerPallas:
    """JAX/Pallas port of XlingEmbeddingLayer.

    One (V, D) embedding table per language, indexed through `lang_dict`.
    forward(lang, batch_input) gathers rows from that language's table;
    unknown languages fall back to language 0 (the torch except-path).
    """

    def __init__(self, lang_dict, vocab_sizes, emb_dim, key, dtype=jnp.float32):
        assert len(lang_dict) == len(vocab_sizes)
        self.lang_dict = dict(lang_dict)
        self.emb_dim = emb_dim
        self.tables = []
        keys = jax.random.split(key, len(vocab_sizes))
        for k, v in zip(keys, vocab_sizes):
            # Deterministic synthetic init (stands in for pretrained_emb_path).
            # TODO(synk): EmbeddingLayer internals (padding_idx zeroing, weight
            # freezing, pretrained-embedding loading) are checkpoint-level
            # details and are not reproduced here.
            self.tables.append(
                (jax.random.normal(k, (v, emb_dim), dtype=jnp.float32) * 0.02
                 ).astype(dtype))

    def get_lang_emb(self, lang):
        return self.tables[self.lang_dict[lang]]

    def forward(self, lang, batch_input):
        try:
            table = self.tables[self.lang_dict[lang]]
        except (KeyError, IndexError):
            table = self.tables[0]
        return embedding_lookup(table, batch_input)

    __call__ = forward


if __name__ == "__main__":
    key = jax.random.PRNGKey(0)
    k_params, k_ids, k_ids2, k_ids3, k_tab2, k_tab3 = jax.random.split(key, 6)

    # Small, module-consistent shapes.
    lang_dict = {"en": 0, "fr": 1, "de": 2}
    vocab_sizes = [64, 48, 56]
    emb_dim = 128
    B, S = 2, 8

    layer = XlingEmbeddingLayerPallas(lang_dict, vocab_sizes, emb_dim, k_params)
    ids = jax.random.randint(k_ids, (B, S), 0, min(vocab_sizes), dtype=jnp.int32)

    # Known-language path and unknown-language fallback path.
    out_fr = jax.block_until_ready(layer("fr", ids))
    out_fb = jax.block_until_ready(layer("xx", ids))

    ref_fr = jnp.take(layer.tables[lang_dict["fr"]], ids, axis=0)
    ref_fb = jnp.take(layer.tables[0], ids, axis=0)
    assert out_fr.shape == (B, S, emb_dim) and out_fr.dtype == jnp.float32
    assert jnp.allclose(out_fr, ref_fr)
    assert out_fb.shape == (B, S, emb_dim)
    assert jnp.allclose(out_fb, ref_fb)

    # Exercise every kernel path (MXU one-hot, VMEM-resident gather, HBM DMA
    # gather), including ragged token counts and a non-lane-aligned emb dim.
    path_cases = (
        ((300, 128), k_tab2, k_ids2, (3, 7)),
        ((40, 72), k_tab3, k_ids3, (2, 5)),
    )
    for (V, D), k_t, k_i, shape in path_cases:
        tab = jax.random.normal(k_t, (V, D), dtype=jnp.float32)
        tids = jax.random.randint(k_i, shape, 0, V, dtype=jnp.int32)
        ref = jnp.take(tab, tids, axis=0)
        for path in ("onehot", "gather_vmem", "gather_hbm"):
            got = jax.block_until_ready(
                embedding_lookup(tab, tids, force_path=path))
            assert got.shape == ref.shape, (path, got.shape, ref.shape)
            assert jnp.allclose(got, ref), path

    print("KERNEL_OK")
</pallas_src>

<mosaic_0001>
module attributes {stable_mosaic.version = 11 : i64} {
  func.func @_onehot_block_kernel(%arg0: i32, %arg1: memref<8x1xi32, #tpu.memory_space<vmem>>, %arg2: memref<48x128xf32, #tpu.memory_space<vmem>>, %arg3: memref<8x128xf32, #tpu.memory_space<vmem>>) attributes {dimension_semantics = [#tpu.dimension_semantics<parallel>], iteration_bounds = array<i64: 2>, scalar_prefetch = 0 : i64, scratch_operands = 0 : i64, tpu.core_type = #tpu.core_type<tc>, window_params = [{transform_indices = @transform_0, window_bounds = array<i64: 8, 1>}, {pipeline_mode = #tpu.pipeline_mode<synchronous>, transform_indices = @transform_1, window_bounds = array<i64: 48, 128>}, {transform_indices = @transform_2, window_bounds = array<i64: 8, 128>}]} {
    %0 = tpu.iota {dimensions = array<i32: 1>} : vector<8x48xi32>
    %c0 = arith.constant 0 : index
    %c0_0 = arith.constant 0 : index
    %1 = vector.load %arg1[%c0, %c0_0] : memref<8x1xi32, #tpu.memory_space<vmem>>, vector<8x1xi32>
    %2 = vector.broadcast %1 : vector<8x1xi32> to vector<8x48xi32>
    %3 = arith.cmpi eq, %2, %0 : vector<8x48xi32>
    %4 = arith.extui %3 : vector<8x48xi1> to vector<8x48xi32>
    %5 = arith.sitofp %4 : vector<8x48xi32> to vector<8x48xf32>
    %c0_1 = arith.constant 0 : index
    %c0_2 = arith.constant 0 : index
    %6 = vector.load %arg2[%c0_1, %c0_2] : memref<48x128xf32, #tpu.memory_space<vmem>>, vector<48x128xf32>
    %cst = arith.constant dense<0.000000e+00> : vector<8x128xf32>
    %7 = tpu.matmul %5, %6, %cst {dimension_numbers = #tpu.dot_dimension_numbers<[1], [0], [0], [1], [0, 0, 1, 1], [], []>} : vector<8x48xf32>, vector<48x128xf32>, vector<8x128xf32> -> vector<8x128xf32>
    %c0_3 = arith.constant 0 : index
    %c0_4 = arith.constant 0 : index
    %8 = vector.load %arg3[%c0_3, %c0_4] : memref<8x128xf32, #tpu.memory_space<vmem>>, vector<8x128xf32>
    tpu.vector_store %arg3[%c0_3, %c0_4], %7 {strides = array<i32>} : memref<8x128xf32, #tpu.memory_space<vmem>>, vector<8x128xf32>,
    return
  }
  func.func @transform_0(%arg0: i32) -> (i32, i32) {
    %c0_i32 = arith.constant 0 : i32
    %c0_i32_0 = arith.constant 0 : i32
    return %arg0, %c0_i32 : i32, i32
  }
  func.func @transform_1(%arg0: i32) -> (i32, i32) {
    %c0_i32 = arith.constant 0 : i32
    %c0_i32_0 = arith.constant 0 : i32
    %c0_i32_1 = arith.constant 0 : i32
    return %c0_i32, %c0_i32_0 : i32, i32
  }
  func.func @transform_2(%arg0: i32) -> (i32, i32) {
    %c0_i32 = arith.constant 0 : i32
    %c0_i32_0 = arith.constant 0 : i32
    return %arg0, %c0_i32 : i32, i32
  }
}

</mosaic_0001>

<bundles_post_ra>
// kernel: tpu_custom_call.1
= control target key start
LH: loop header
LB: loop body
LE: loop exit
PB: predicated region body
PF: predicated region fallthrough
CT: control target
= control target key end

     0   :  { %7 = vsyncpa [#allocation3], 0  ;;  %s565_s0 = inlined_call_operand.vmem [shape: s32[16,1], index: 0, kind: input, shape index: {}]   ;;  %s566_s1 = inlined_call_operand.hbm [shape: f32[48,128], index: 1, kind: input, shape index: {}]   ;;  %s567_s2 = inlined_call_operand.hbm [shape: f32[16,128], index: 2, kind: output, shape index: {}]  }
   0x1   :  { %8 = vsyncpa [#allocation4], 0 }
   0x2   :  { %10 = vsyncpa [#allocation4 + $0x1], 0  ;;  %s470_s9 = smov 0   ;;  %s472_s10 = smov 0  }
   0x3   :  { %s474_s11 = smov 0   ;;  %s476_s12 = smov 0  }
   0x4 LB: > { %s491_s13 = sadd.s32 4294967295, %s448_s12   ;;  %s283_s14 = sadd.s32 4294967294, %s448_s12   ;;  %s448_s12 = sphi %s476_s12, %s573_s12   ;;  %s444_s11 = sphi %s474_s11, %s572_s11   ;;  %s440_s10 = sphi %s472_s10, %s571_s10   ;;  %s436_s9 = sphi %s470_s9, %s570_s9  }
   0x5   : > { %s495_s15 = sadd.s32 1, %s448_s12   ;;  %s70_s16 = sadd.s32 1, %s444_s11 }
   0x6   : > { %s67_s17 = ssub.s32 %s448_s12, %s495_s15  ;;  %p80_p0 = scmp.ne.s32.totalorder %s444_s11, %s440_s10 }
   0x7   : > { %p68_p1 = scmp.eq.s32.totalorder %s67_s17, 0  ;;  %p81_p2 = scmp.eq.s32.totalorder %s491_s13, 1 }
   0x8   : > { %p86_p3 = scmp.ne.s32.totalorder %s440_s10, %s436_s9  ;;  %p87_p4 = scmp.eq.s32.totalorder %s283_s14, 1 }
   0x9   : > { %s506_s18 = scalar_select %p68_p1, %s444_s11, %s70_s16  }
   0xa   : > { %p508_p5 = por %p81_p2, %p80_p0  ;;  %p512_p6 = por %p87_p4, %p86_p3 }
   0xb   : > { %p284_p7 = scmp.ge.s32.totalorder %s448_s12, 1  ;;  %p94_p8 = scmp.lt.s32.totalorder %s448_s12, 3 }
   0xc   : > { %p311_p9 = scmp.eq.s32.totalorder %s491_s13, 0  ;;  %s105_s23 = sshll.u32 %s566_s1, 4  ;;  %s106_s23 = int_to_ptr.hbm [resolvable:$true] %s105_s23 }
   0xd   : > { %p95_p10 = pnand %p284_p7, %p94_p8  ;;  %s450_s24 = smov [#allocation2]  }
   0xe   : > { %s107_s25 = sshll.u32 %s450_s24, 4  ;;  %s451_s26 = smov 128   ;;  %s108_s25 = int_to_ptr.vmem [resolvable:$true] %s107_s25 }
   0xf   : > { %p303_p11 = pneg %p95_p10  ;;  %s452_s27 = smov 8  }
  0x10   : > { %130 = sbr.rel (%p95_p10) target bundleno = 275 (0x113), region = 28 }
  0x11   : > { %p304_p12 = pnand %p311_p9, %p303_p11 }
  0x13   : > { %306 = dma.hbm_to_vmem [thread:$0]  (!%p304_p12), %s106_s23, 768, %s108_s25, [#allocation3], %s451_s26, %s451_s26, %s452_s27  }
  0x15   : > { %427 = dma.done.wait (%p311_p9), [#allocation3], 768  }
  0x16   : > { %429 = vsyncadd (%p311_p9), [#allocation3], 4294966528  ;;  %p152_p13 = scmp.lt.s32.totalorder %s491_s13, 1  ;;  %v453_v0 = vmov 0   ;;  %v170_v2 = vld [vmem:[#allocation2 + $0x28] sm:$0xff]  ;;  %v169_v3 = vld [vmem:[#allocation2 + $0x20] sm:$0xff]  ;;  %v156_v8 = vlaneseq }
  0x17   : > { %351 = vset.pattern.permute.xlu0 %v453_v0  ;;  %185 = vmatpush.msra.mxu0 %v170_v2  ;;  %v168_v4 = vld [vmem:[#allocation2 + $0x18] sm:$0xff]  ;;  %v167_v5 = vld [vmem:[#allocation2 + $0x10] sm:$0xff]  ;;  %v166_v6 = vld [vmem:[#allocation2 + $0x8] sm:$0xff]  ;;  %vm171_vm0 = vcmask 392192   ;;  %v454_v11 = vmov 0.0   ;;  %s149_s5 = sand.u32 1, %s440_s10  }
  0x18   : > { %s153_s28 = scalar_select %p152_p13, %s491_s13, 1  ;;  %v165_v7 = vld [vmem:[#allocation2] sm:$0xff]  ;;  %v157_v9 = vand.u32 127, %v156_v8 }
  0x19   : > { %186 = vmatpush.msra.mxu0 %v169_v3  ;;  %s289_s6 = sshll.u32 %s149_s5, 3  ;;  %s294_s7 = sshll.u32 %s491_s13, 3 }
  0x1a   : > { %s290_s29 = sshll.u32 %s153_s28, 3  ;;  %s207_s16 = scalar_lea.hbm %s567_s2, %s294_s7 }
  0x1b   : > { %s155_s4 = scalar_lea.vmem %s565_s0, %s290_s29  ;;  %187 = vmatpush.msra.mxu0 %v168_v4  ;;  %s151_s17 = scalar_lea.vmem [#allocation5], %s289_s6 }
  0x1c   : > { %v158_v1 = vld [vmem:[%s155_s4] sm:$0xff]  ;;  %s209_s21 = sshll.u32 %s151_s17, 4  ;;  %s211_s22 = sshll.u32 %s207_s16, 4  ;;  %s210_s21 = int_to_ptr.vmem [resolvable:$true] %s209_s21  ;;  %s212_s22 = int_to_ptr.hbm [resolvable:$true] %s211_s22 }
  0x1d   : > { %160 = vperm.xlu0 %351, %v158_v1   ;;  %188 = vmatpush.msra.mxu0 %v167_v5  ;;  %s197_s23 = scalar_lea.sflag [#allocation4], %s149_s5  ;;  %s396_s24 = sshra.s32 %s212_s22, 4  ;;  %s397_s24 = int_to_ptr.hbm [resolvable:$true] %s396_s24 }
  0x1e   : > { %s398_s25 = scalar_lea.hbm %s397_s24, 8  ;;  %s402_s27 = scalar_lea.hbm %s567_s2, 16 }
  0x1f   : > { %189 = vmatpush.msra.mxu0 %v166_v6  ;;  %p399_p0 = scmp.ne.s32.totalorder %s397_s24, %s398_s25  ;;  %p403_p3 = scmp.lt.s32.totalorder %s397_s24, %s567_s2 }
  0x20   : > { %p404_p4 = scmp.lt.s32.totalorder %s402_s27, %s398_s25 }
  0x21   : > { %190 = vmatpush.msra.mxu0 %v165_v7  ;;  %p400_p1 = pnand %p399_p0, %p508_p5 }
  0x22   : > { %p405_p7 = por %p404_p4, %p403_p3 }
  0x23   : > { %p401_p2 = pneg %p400_p1 }
  0x25   : > { %p406_p8 = pnand %p405_p7, %p401_p2 }
  0x8f   : > { %v161_v10 = vpop.permute.xlu0 %160 }
  0x90   : > { %vm162_vm1 = vcmp.eq.s32.totalorder %v161_v10, %v157_v9 }
  0x91   : > { %v291_v12 = vsel %vm162_vm1, 1.0, %v454_v11 }
  0x92   : > { %292 = vmatmul.msk.f32.vlgmr.msra.gmra.mxu0 %vm171_vm0, %v291_v12 }
 0x10f   : > { %v192_v13 = vpop.f32.mrf.mxu0 }
 0x110   : > { %195 = vst [vmem:[%s151_s17] sm:$0xff] %v192_v13 }
 0x111   : > { %409 = shalt.err (!%p406_p8)
}
 0x112   : > { %301 = dma.vmem_to_hbm [thread:$0]  (%p508_p5), %s210_s21, 128, %s212_s22, %s197_s23  }
 0x113 PF: > { %p313_p9 = scmp.ge.s32.totalorder %s448_s12, 2  ;;  %s223_s30 = sand.u32 1, %s436_s9  }
 0x114   : > { %s224_s3 = scalar_lea.sflag [#allocation4], %s223_s30 }
 0x115   : > { %p308_p10 = pnand %p313_p9, %p512_p6 }
 0x117   : > { %p309_p11 = pneg %p308_p10 }
 0x119   : > { %431 = dma.done.wait (%p309_p11), %s224_s3, 128  }
 0x11a   : > { %433 = vsyncadd (%p309_p11), %s224_s3, 4294967168  ;;  %p13_p12 = scmp.ge.s32.totalorder %s495_s15, 4   ;;  %s570_s9 = smov %s440_s10 }
 0x11b   : > { %s571_s10 = smov %s444_s11  ;;  %s572_s11 = smov %s506_s18 }
 0x11c   : > { %s573_s12 = smov %s495_s15  ;;  %15 = sbr.rel (!%p13_p12) target bundleno = 4 (0x4), region = 68 }
 0x121   :  { %230 = vsyncpa [#allocation3], 1 }
 0x122   :  { %232 = vsyncpa [#allocation3 + $0x1], 1 }
 0x123   :  { %233 = vsyncpa [#allocation4], 1 }
 0x124   :  { %235 = vsyncpa [#allocation4 + $0x1], 1 }

</bundles_post_ra>
